<compile_context>
chip_gen: v5e
topology: v5e:2x2
jax: 0.10.0
libtpu: 0.0.40
codegen_flags: <defaults>
</compile_context>

<pallas_src>
import jax
import jax.numpy as jnp
from jax.experimental import pallas as pl
from jax.experimental.pallas import tpu as pltpu

F32 = jnp.float32


# ------------------------------ fused Pallas kernel ------------------------------ #

def _fused_kernel(x_ref, adj_ref, score_ref, perm_ref, eli_ref,
                  h0_ref, wih_t_ref, whh_t_ref, bih_ref, bhh_ref,
                  wsum_ref, bsum_ref, out_ref):
    """Fused GRU -> GCN -> link head.

    x:      (N, F)  node features
    adj:    (N, N)  dense unnormalized adjacency (adj[col, row] = multiplicity)
    score:  (1, N)  tanh(x @ p / ||p||)
    perm:   (F, 1)  int32 top-k node indices
    eli:    (2, EL) int32 edge_label_index
    h0:     (F, F)  EvolveGCNH initial weight (GRU hidden state)
    wih_t:  (3, F, F) per-gate transposed W_ih   (gate order r, z, n)
    whh_t:  (3, F, F) per-gate transposed W_hh
    bih:    (3, 1, F) per-gate b_ih
    bhh:    (3, 1, F) per-gate b_hh
    wsum:   (1, F)  post_w.sum(0)
    bsum:   (1, 1)  post_b.sum()
    out:    (1, EL) lane-dense edge scores
    """
    fdim = h0_ref.shape[0]
    n = x_ref.shape[0]
    el = out_ref.shape[1]

    x = x_ref[...]

    # --- TopK gather: X~ = x[perm] * score[perm] via scaled one-hot matmul (MXU) ---
    perm = perm_ref[...]                                                    # (F, 1) int32
    sel = (jax.lax.broadcasted_iota(jnp.int32, (fdim, n), 1) == perm)       # (F, N) bool
    scaled_sel = sel.astype(F32) * score_ref[...]                           # (F, N)
    x_tilde = jnp.dot(scaled_sel, x, preferred_element_type=F32)            # (F, F)

    # --- GRU cell: one matmul per gate -> no sub-vreg lane slicing ---
    h0 = h0_ref[...]

    def gate(g):
        gi = jnp.dot(x_tilde, wih_t_ref[g], preferred_element_type=F32) + bih_ref[g]
        gh = jnp.dot(h0, whh_t_ref[g], preferred_element_type=F32) + bhh_ref[g]
        return gi, gh

    gi_r, gh_r = gate(0)
    gi_z, gh_z = gate(1)
    gi_n, gh_n = gate(2)
    r = jax.nn.sigmoid(gi_r + gh_r)
    z = jax.nn.sigmoid(gi_z + gh_z)
    cand = jnp.tanh(gi_n + r * gh_n)
    w_new = (1.0 - z) * cand + z * h0                                       # (F, F)

    # --- GCNConv_Fixed_W + ReLU, with D^-1/2 normalization folded in ---
    adj = adj_ref[...]
    deg = jnp.sum(adj, axis=1, keepdims=True)                               # (N, 1) in-degree
    dis = jnp.where(deg > 0.0, jax.lax.rsqrt(deg), 0.0)                     # (N, 1)
    xw = jnp.dot(x, w_new, preferred_element_type=F32)                      # (N, F)
    agg = jnp.dot(adj, dis * xw, preferred_element_type=F32)                # (N, F)
    h = jnp.maximum(dis * agg, 0.0)                                         # (N, F)

    # --- link head: transposed one-hot gathers keep the EL axis on lanes ---
    eli = eli_ref[...]                                                      # (2, EL) int32
    src_ids = eli[0:1, :]                                                   # (1, EL)
    dst_ids = eli[1:2, :]                                                   # (1, EL)
    node_iota = jax.lax.broadcasted_iota(jnp.int32, (n, el), 0)
    sel_src_t = (node_iota == src_ids).astype(F32)                          # (N, EL)
    sel_dst_t = (node_iota == dst_ids).astype(F32)                          # (N, EL)
    h_t = jnp.transpose(h)                                                  # (F, N)
    h_src_t = jnp.dot(h_t, sel_src_t, preferred_element_type=F32)           # (F, EL)
    h_dst_t = jnp.dot(h_t, sel_dst_t, preferred_element_type=F32)           # (F, EL)
    had_t = h_src_t * h_dst_t                                               # (F, EL)

    # sum(Linear(had), -1) == had @ post_w.sum(0) + post_b.sum()
    scores = jnp.dot(wsum_ref[...], had_t, preferred_element_type=F32) + bsum_ref[...]
    out_ref[...] = scores                                                   # (1, EL)


def fused_forward(x, adj, score_row, perm_col, eli,
                  h0, wih_t, whh_t, bih, bhh, wsum, bsum):
    el = eli.shape[1]
    args = (x, adj, score_row, perm_col, eli, h0, wih_t, whh_t, bih, bhh, wsum, bsum)
    return pl.pallas_call(
        _fused_kernel,
        out_shape=jax.ShapeDtypeStruct((1, el), F32),
        in_specs=[pl.BlockSpec(memory_space=pltpu.MemorySpace.VMEM) for _ in args],
        out_specs=pl.BlockSpec(memory_space=pltpu.MemorySpace.VMEM),
    )(*args)


# ---------------------------------- parameters ----------------------------------- #

def init_params(key, num_nodes, in_channels):
    f = in_channels
    ks = jax.random.split(key, 8)

    def glorot(k, shape):
        bound = jnp.sqrt(6.0 / (shape[-2] + shape[-1]))
        return jax.random.uniform(k, shape, F32, -bound, bound)

    std = 1.0 / jnp.sqrt(jnp.asarray(f, F32))
    return dict(
        pool_w=glorot(ks[0], (1, f))[0],                 # TopKPooling weight -> (F,)
        gru_h0=glorot(ks[1], (f, f)),                    # EvolveGCNH.initial_weight
        # GRU weights stored pre-split & pre-transposed per gate (r, z, n): kernel layout.
        gru_wih_t=jax.random.uniform(ks[2], (3, f, f), F32, -std, std),
        gru_whh_t=jax.random.uniform(ks[3], (3, f, f), F32, -std, std),
        gru_bih=jax.random.uniform(ks[4], (3, 1, f), F32, -std, std),
        gru_bhh=jax.random.uniform(ks[5], (3, 1, f), F32, -std, std),
        post_w=jax.random.uniform(ks[6], (2, f), F32, -std, std),   # nn.Linear(F, 2)
        post_b=jax.random.uniform(ks[7], (2,), F32, -std, std),
    )


# ------------------------------------ forward ------------------------------------ #

def taobao_evolvegcn_forward(params, x, edge_index, edge_label_index):
    num_nodes, f = x.shape

    # TopKPooling scoring + top-k selection.  The sort has no Pallas equivalent;
    # the actual row gather happens inside the fused kernel via a one-hot matmul.
    p = params["pool_w"]                                     # (F,)
    score = jnp.tanh((x @ p) / jnp.linalg.norm(p))           # (N,)
    _, perm = jax.lax.top_k(score, f)                        # k = F

    # Dense adjacency via scatter-add (no Pallas scatter); normalization is folded
    # into the kernel (rsqrt(in-degree) row/col scaling).
    row, col = edge_index[0], edge_index[1]
    adj = jnp.zeros((num_nodes, num_nodes), F32).at[col, row].add(1.0)

    # Fold nn.Linear(F, 2) + sum(-1) into a single (F,) weight vector and scalar bias.
    wsum = jnp.sum(params["post_w"], axis=0)[None, :]        # (1, F)
    bsum = jnp.sum(params["post_b"]).reshape(1, 1)           # (1, 1)

    out = fused_forward(
        x, adj,
        score[None, :].astype(F32),
        perm[:, None].astype(jnp.int32),
        edge_label_index.astype(jnp.int32),
        params["gru_h0"], params["gru_wih_t"], params["gru_whh_t"],
        params["gru_bih"], params["gru_bhh"],
        wsum, bsum,
    )                                                        # (1, EL)
    return out[0]                                            # (EL,)


# -------------------------------------- main -------------------------------------- #

if __name__ == "__main__":
    N, F_IN, E, EL = 64, 32, 256, 16   # num_nodes, in_channels, #edges, #label edges

    key = jax.random.PRNGKey(0)
    kx, ke, kl, kp = jax.random.split(key, 4)
    x = jax.random.normal(kx, (N, F_IN), F32)
    edge_index = jax.random.randint(ke, (2, E), 0, N, dtype=jnp.int32)
    edge_label_index = jax.random.randint(kl, (2, EL), 0, N, dtype=jnp.int32)
    params = init_params(kp, N, F_IN)

    fwd = jax.jit(taobao_evolvegcn_forward)
    out = fwd(params, x, edge_index, edge_label_index)
    out = jax.block_until_ready(out)
    assert out.shape == (EL,) and out.dtype == F32

    # TODO(synk): for a real temporal EvolveGCN run (T snapshots), add a grid axis over
    # timesteps carrying the evolving W in persistent VMEM scratch instead of one-shot.

    print("KERNEL_OK")
</pallas_src>

<mosaic_0001>
module attributes {stable_mosaic.version = 11 : i64} {
  func.func @_fused_kernel(%arg0: memref<64x32xf32, #tpu.memory_space<vmem>>, %arg1: memref<64x64xf32, #tpu.memory_space<vmem>>, %arg2: memref<1x64xf32, #tpu.memory_space<vmem>>, %arg3: memref<32x1xi32, #tpu.memory_space<vmem>>, %arg4: memref<2x16xi32, #tpu.memory_space<vmem>>, %arg5: memref<32x32xf32, #tpu.memory_space<vmem>>, %arg6: memref<3x32x32xf32, #tpu.memory_space<vmem>>, %arg7: memref<3x32x32xf32, #tpu.memory_space<vmem>>, %arg8: memref<3x1x32xf32, #tpu.memory_space<vmem>>, %arg9: memref<3x1x32xf32, #tpu.memory_space<vmem>>, %arg10: memref<1x32xf32, #tpu.memory_space<vmem>>, %arg11: memref<1x1xf32, #tpu.memory_space<vmem>>, %arg12: memref<1x16xf32, #tpu.memory_space<vmem>>) attributes {dimension_semantics = [], scalar_prefetch = 0 : i64, scratch_operands = 0 : i64, tpu.core_type = #tpu.core_type<tc>} {
    %c0 = arith.constant 0 : index
    %c0_0 = arith.constant 0 : index
    %0 = vector.load %arg0[%c0, %c0_0] : memref<64x32xf32, #tpu.memory_space<vmem>>, vector<64x32xf32>
    %c0_1 = arith.constant 0 : index
    %c0_2 = arith.constant 0 : index
    %1 = vector.load %arg3[%c0_1, %c0_2] : memref<32x1xi32, #tpu.memory_space<vmem>>, vector<32x1xi32>
    %2 = tpu.iota {dimensions = array<i32: 1>} : vector<32x64xi32>
    %3 = vector.broadcast %1 : vector<32x1xi32> to vector<32x64xi32>
    %4 = arith.cmpi eq, %2, %3 : vector<32x64xi32>
    %5 = arith.extui %4 : vector<32x64xi1> to vector<32x64xi32>
    %6 = arith.sitofp %5 : vector<32x64xi32> to vector<32x64xf32>
    %c0_3 = arith.constant 0 : index
    %c0_4 = arith.constant 0 : index
    %7 = vector.load %arg2[%c0_3, %c0_4] : memref<1x64xf32, #tpu.memory_space<vmem>>, vector<1x64xf32>
    %8 = vector.broadcast %7 : vector<1x64xf32> to vector<32x64xf32>
    %9 = arith.mulf %6, %8 : vector<32x64xf32>
    %cst = arith.constant dense<0.000000e+00> : vector<32x32xf32>
    %10 = tpu.matmul %9, %0, %cst {dimension_numbers = #tpu.dot_dimension_numbers<[1], [0], [0], [1], [0, 0, 1, 1], [], []>} : vector<32x64xf32>, vector<64x32xf32>, vector<32x32xf32> -> vector<32x32xf32>
    %c0_5 = arith.constant 0 : index
    %c0_6 = arith.constant 0 : index
    %11 = vector.load %arg5[%c0_5, %c0_6] : memref<32x32xf32, #tpu.memory_space<vmem>>, vector<32x32xf32>
    %c0_7 = arith.constant 0 : index
    %c0_8 = arith.constant 0 : index
    %c0_9 = arith.constant 0 : index
    %12 = vector.load %arg6[%c0_7, %c0_8, %c0_9] : memref<3x32x32xf32, #tpu.memory_space<vmem>>, vector<1x32x32xf32>
    %13 = vector.shape_cast %12 : vector<1x32x32xf32> to vector<32x32xf32>
    %cst_10 = arith.constant dense<0.000000e+00> : vector<32x32xf32>
    %14 = tpu.matmul %10, %13, %cst_10 {dimension_numbers = #tpu.dot_dimension_numbers<[1], [0], [0], [1], [0, 0, 1, 1], [], []>} : vector<32x32xf32>, vector<32x32xf32>, vector<32x32xf32> -> vector<32x32xf32>
    %c0_11 = arith.constant 0 : index
    %c0_12 = arith.constant 0 : index
    %c0_13 = arith.constant 0 : index
    %15 = vector.load %arg8[%c0_11, %c0_12, %c0_13] : memref<3x1x32xf32, #tpu.memory_space<vmem>>, vector<1x1x32xf32>
    %16 = vector.shape_cast %15 : vector<1x1x32xf32> to vector<1x32xf32>
    %17 = vector.broadcast %16 : vector<1x32xf32> to vector<32x32xf32>
    %18 = arith.addf %14, %17 : vector<32x32xf32>
    %c0_14 = arith.constant 0 : index
    %c0_15 = arith.constant 0 : index
    %c0_16 = arith.constant 0 : index
    %19 = vector.load %arg7[%c0_14, %c0_15, %c0_16] : memref<3x32x32xf32, #tpu.memory_space<vmem>>, vector<1x32x32xf32>
    %20 = vector.shape_cast %19 : vector<1x32x32xf32> to vector<32x32xf32>
    %cst_17 = arith.constant dense<0.000000e+00> : vector<32x32xf32>
    %21 = tpu.matmul %11, %20, %cst_17 {dimension_numbers = #tpu.dot_dimension_numbers<[1], [0], [0], [1], [0, 0, 1, 1], [], []>} : vector<32x32xf32>, vector<32x32xf32>, vector<32x32xf32> -> vector<32x32xf32>
    %c0_18 = arith.constant 0 : index
    %c0_19 = arith.constant 0 : index
    %c0_20 = arith.constant 0 : index
    %22 = vector.load %arg9[%c0_18, %c0_19, %c0_20] : memref<3x1x32xf32, #tpu.memory_space<vmem>>, vector<1x1x32xf32>
    %23 = vector.shape_cast %22 : vector<1x1x32xf32> to vector<1x32xf32>
    %24 = vector.broadcast %23 : vector<1x32xf32> to vector<32x32xf32>
    %25 = arith.addf %21, %24 : vector<32x32xf32>
    %c1 = arith.constant 1 : index
    %c0_21 = arith.constant 0 : index
    %c0_22 = arith.constant 0 : index
    %26 = vector.load %arg6[%c1, %c0_21, %c0_22] : memref<3x32x32xf32, #tpu.memory_space<vmem>>, vector<1x32x32xf32>
    %27 = vector.shape_cast %26 : vector<1x32x32xf32> to vector<32x32xf32>
    %cst_23 = arith.constant dense<0.000000e+00> : vector<32x32xf32>
    %28 = tpu.matmul %10, %27, %cst_23 {dimension_numbers = #tpu.dot_dimension_numbers<[1], [0], [0], [1], [0, 0, 1, 1], [], []>} : vector<32x32xf32>, vector<32x32xf32>, vector<32x32xf32> -> vector<32x32xf32>
    %c1_24 = arith.constant 1 : index
    %c0_25 = arith.constant 0 : index
    %c0_26 = arith.constant 0 : index
    %29 = vector.load %arg8[%c1_24, %c0_25, %c0_26] : memref<3x1x32xf32, #tpu.memory_space<vmem>>, vector<1x1x32xf32>
    %30 = vector.shape_cast %29 : vector<1x1x32xf32> to vector<1x32xf32>
    %31 = vector.broadcast %30 : vector<1x32xf32> to vector<32x32xf32>
    %32 = arith.addf %28, %31 : vector<32x32xf32>
    %c1_27 = arith.constant 1 : index
    %c0_28 = arith.constant 0 : index
    %c0_29 = arith.constant 0 : index
    %33 = vector.load %arg7[%c1_27, %c0_28, %c0_29] : memref<3x32x32xf32, #tpu.memory_space<vmem>>, vector<1x32x32xf32>
    %34 = vector.shape_cast %33 : vector<1x32x32xf32> to vector<32x32xf32>
    %cst_30 = arith.constant dense<0.000000e+00> : vector<32x32xf32>
    %35 = tpu.matmul %11, %34, %cst_30 {dimension_numbers = #tpu.dot_dimension_numbers<[1], [0], [0], [1], [0, 0, 1, 1], [], []>} : vector<32x32xf32>, vector<32x32xf32>, vector<32x32xf32> -> vector<32x32xf32>
    %c1_31 = arith.constant 1 : index
    %c0_32 = arith.constant 0 : index
    %c0_33 = arith.constant 0 : index
    %36 = vector.load %arg9[%c1_31, %c0_32, %c0_33] : memref<3x1x32xf32, #tpu.memory_space<vmem>>, vector<1x1x32xf32>
    %37 = vector.shape_cast %36 : vector<1x1x32xf32> to vector<1x32xf32>
    %38 = vector.broadcast %37 : vector<1x32xf32> to vector<32x32xf32>
    %39 = arith.addf %35, %38 : vector<32x32xf32>
    %c2 = arith.constant 2 : index
    %c0_34 = arith.constant 0 : index
    %c0_35 = arith.constant 0 : index
    %40 = vector.load %arg6[%c2, %c0_34, %c0_35] : memref<3x32x32xf32, #tpu.memory_space<vmem>>, vector<1x32x32xf32>
    %41 = vector.shape_cast %40 : vector<1x32x32xf32> to vector<32x32xf32>
    %cst_36 = arith.constant dense<0.000000e+00> : vector<32x32xf32>
    %42 = tpu.matmul %10, %41, %cst_36 {dimension_numbers = #tpu.dot_dimension_numbers<[1], [0], [0], [1], [0, 0, 1, 1], [], []>} : vector<32x32xf32>, vector<32x32xf32>, vector<32x32xf32> -> vector<32x32xf32>
    %c2_37 = arith.constant 2 : index
    %c0_38 = arith.constant 0 : index
    %c0_39 = arith.constant 0 : index
    %43 = vector.load %arg8[%c2_37, %c0_38, %c0_39] : memref<3x1x32xf32, #tpu.memory_space<vmem>>, vector<1x1x32xf32>
    %44 = vector.shape_cast %43 : vector<1x1x32xf32> to vector<1x32xf32>
    %45 = vector.broadcast %44 : vector<1x32xf32> to vector<32x32xf32>
    %46 = arith.addf %42, %45 : vector<32x32xf32>
    %c2_40 = arith.constant 2 : index
    %c0_41 = arith.constant 0 : index
    %c0_42 = arith.constant 0 : index
    %47 = vector.load %arg7[%c2_40, %c0_41, %c0_42] : memref<3x32x32xf32, #tpu.memory_space<vmem>>, vector<1x32x32xf32>
    %48 = vector.shape_cast %47 : vector<1x32x32xf32> to vector<32x32xf32>
    %cst_43 = arith.constant dense<0.000000e+00> : vector<32x32xf32>
    %49 = tpu.matmul %11, %48, %cst_43 {dimension_numbers = #tpu.dot_dimension_numbers<[1], [0], [0], [1], [0, 0, 1, 1], [], []>} : vector<32x32xf32>, vector<32x32xf32>, vector<32x32xf32> -> vector<32x32xf32>
    %c2_44 = arith.constant 2 : index
    %c0_45 = arith.constant 0 : index
    %c0_46 = arith.constant 0 : index
    %50 = vector.load %arg9[%c2_44, %c0_45, %c0_46] : memref<3x1x32xf32, #tpu.memory_space<vmem>>, vector<1x1x32xf32>
    %51 = vector.shape_cast %50 : vector<1x1x32xf32> to vector<1x32xf32>
    %52 = vector.broadcast %51 : vector<1x32xf32> to vector<32x32xf32>
    %53 = arith.addf %49, %52 : vector<32x32xf32>
    %54 = arith.addf %18, %25 : vector<32x32xf32>
    %55 = arith.negf %54 : vector<32x32xf32>
    %56 = math.exp %55 : vector<32x32xf32>
    %cst_47 = arith.constant 1.000000e+00 : f32
    %57 = vector.broadcast %cst_47 : f32 to vector<32x32xf32>
    %58 = arith.addf %57, %56 : vector<32x32xf32>
    %59 = arith.divf %57, %58 : vector<32x32xf32>
    %60 = arith.addf %32, %39 : vector<32x32xf32>
    %61 = arith.negf %60 : vector<32x32xf32>
    %62 = math.exp %61 : vector<32x32xf32>
    %cst_48 = arith.constant 1.000000e+00 : f32
    %63 = vector.broadcast %cst_48 : f32 to vector<32x32xf32>
    %64 = arith.addf %63, %62 : vector<32x32xf32>
    %65 = arith.divf %63, %64 : vector<32x32xf32>
    %66 = arith.mulf %59, %53 : vector<32x32xf32>
    %67 = arith.addf %46, %66 : vector<32x32xf32>
    %68 = math.tanh %67 : vector<32x32xf32>
    %cst_49 = arith.constant 1.000000e+00 : f32
    %69 = vector.broadcast %cst_49 : f32 to vector<32x32xf32>
    %70 = arith.subf %69, %65 : vector<32x32xf32>
    %71 = arith.mulf %70, %68 : vector<32x32xf32>
    %72 = arith.mulf %65, %11 : vector<32x32xf32>
    %73 = arith.addf %71, %72 : vector<32x32xf32>
    %c0_50 = arith.constant 0 : index
    %c0_51 = arith.constant 0 : index
    %74 = vector.load %arg1[%c0_50, %c0_51] : memref<64x64xf32, #tpu.memory_space<vmem>>, vector<64x64xf32>
    %cst_52 = arith.constant dense<0.000000e+00> : vector<64xf32>
    %75 = vector.multi_reduction <add>, %74, %cst_52 [1] : vector<64x64xf32> to vector<64xf32>
    %76 = vector.shape_cast %75 : vector<64xf32> to vector<64x1xf32>
    %cst_53 = arith.constant 0.000000e+00 : f32
    %77 = vector.broadcast %cst_53 : f32 to vector<64x1xf32>
    %78 = arith.cmpf ogt, %76, %77 : vector<64x1xf32>
    %79 = math.rsqrt %76 : vector<64x1xf32>
    %cst_54 = arith.constant 0.000000e+00 : f32
    %80 = vector.broadcast %cst_54 : f32 to vector<64x1xf32>
    %81 = arith.select %78, %79, %80 : vector<64x1xi1>, vector<64x1xf32>
    %cst_55 = arith.constant dense<0.000000e+00> : vector<64x32xf32>
    %82 = tpu.matmul %0, %73, %cst_55 {dimension_numbers = #tpu.dot_dimension_numbers<[1], [0], [0], [1], [0, 0, 1, 1], [], []>} : vector<64x32xf32>, vector<32x32xf32>, vector<64x32xf32> -> vector<64x32xf32>
    %83 = vector.broadcast %81 : vector<64x1xf32> to vector<64x32xf32>
    %84 = arith.mulf %83, %82 : vector<64x32xf32>
    %cst_56 = arith.constant dense<0.000000e+00> : vector<64x32xf32>
    %85 = tpu.matmul %74, %84, %cst_56 {dimension_numbers = #tpu.dot_dimension_numbers<[1], [0], [0], [1], [0, 0, 1, 1], [], []>} : vector<64x64xf32>, vector<64x32xf32>, vector<64x32xf32> -> vector<64x32xf32>
    %86 = vector.broadcast %81 : vector<64x1xf32> to vector<64x32xf32>
    %87 = arith.mulf %86, %85 : vector<64x32xf32>
    %cst_57 = arith.constant 0.000000e+00 : f32
    %88 = vector.broadcast %cst_57 : f32 to vector<64x32xf32>
    %89 = arith.maximumf %87, %88 : vector<64x32xf32>
    %c0_58 = arith.constant 0 : index
    %c0_59 = arith.constant 0 : index
    %90 = vector.load %arg4[%c0_58, %c0_59] : memref<2x16xi32, #tpu.memory_space<vmem>>, vector<2x16xi32>
    %91 = vector.extract_strided_slice %90 {offsets = [0, 0], sizes = [1, 16], strides = [1, 1]} : vector<2x16xi32> to vector<1x16xi32>
    %92 = vector.extract_strided_slice %90 {offsets = [1, 0], sizes = [1, 16], strides = [1, 1]} : vector<2x16xi32> to vector<1x16xi32>
    %93 = tpu.iota {dimensions = array<i32: 0>} : vector<64x16xi32>
    %94 = vector.broadcast %91 : vector<1x16xi32> to vector<64x16xi32>
    %95 = arith.cmpi eq, %93, %94 : vector<64x16xi32>
    %96 = arith.extui %95 : vector<64x16xi1> to vector<64x16xi32>
    %97 = arith.sitofp %96 : vector<64x16xi32> to vector<64x16xf32>
    %98 = vector.broadcast %92 : vector<1x16xi32> to vector<64x16xi32>
    %99 = arith.cmpi eq, %93, %98 : vector<64x16xi32>
    %100 = arith.extui %99 : vector<64x16xi1> to vector<64x16xi32>
    %101 = arith.sitofp %100 : vector<64x16xi32> to vector<64x16xf32>
    %102 = tpu.transpose %89, [1, 0] : vector<64x32xf32> -> vector<32x64xf32>
    %cst_60 = arith.constant dense<0.000000e+00> : vector<32x16xf32>
    %103 = tpu.matmul %102, %97, %cst_60 {dimension_numbers = #tpu.dot_dimension_numbers<[1], [0], [0], [1], [0, 0, 1, 1], [], []>} : vector<32x64xf32>, vector<64x16xf32>, vector<32x16xf32> -> vector<32x16xf32>
    %cst_61 = arith.constant dense<0.000000e+00> : vector<32x16xf32>
    %104 = tpu.matmul %102, %101, %cst_61 {dimension_numbers = #tpu.dot_dimension_numbers<[1], [0], [0], [1], [0, 0, 1, 1], [], []>} : vector<32x64xf32>, vector<64x16xf32>, vector<32x16xf32> -> vector<32x16xf32>
    %105 = arith.mulf %103, %104 : vector<32x16xf32>
    %c0_62 = arith.constant 0 : index
    %c0_63 = arith.constant 0 : index
    %106 = vector.load %arg10[%c0_62, %c0_63] : memref<1x32xf32, #tpu.memory_space<vmem>>, vector<1x32xf32>
    %cst_64 = arith.constant dense<0.000000e+00> : vector<1x16xf32>
    %107 = tpu.matmul %106, %105, %cst_64 {dimension_numbers = #tpu.dot_dimension_numbers<[1], [0], [0], [1], [0, 0, 1, 1], [], []>} : vector<1x32xf32>, vector<32x16xf32>, vector<1x16xf32> -> vector<1x16xf32>
    %c0_65 = arith.constant 0 : index
    %c0_66 = arith.constant 0 : index
    %108 = vector.load %arg11[%c0_65, %c0_66] : memref<1x1xf32, #tpu.memory_space<vmem>>, vector<1x1xf32>
    %109 = vector.broadcast %108 : vector<1x1xf32> to vector<1x16xf32>
    %110 = arith.addf %107, %109 : vector<1x16xf32>
    %c0_67 = arith.constant 0 : index
    %c0_68 = arith.constant 0 : index
    %111 = vector.load %arg12[%c0_67, %c0_68] : memref<1x16xf32, #tpu.memory_space<vmem>>, vector<1x16xf32>
    tpu.vector_store %arg12[%c0_67, %c0_68], %110 {strides = array<i32>} : memref<1x16xf32, #tpu.memory_space<vmem>>, vector<1x16xf32>,
    return
  }
}

</mosaic_0001>

<bundles_post_ra>
// kernel: taobao_evolvegcn_forward.1
= control target key start
LH: loop header
LB: loop body
LE: loop exit
PB: predicated region body
PF: predicated region fallthrough
CT: control target
= control target key end

     0   :  { %s2090_s0 = inlined_call_operand.vmem [shape: f32[64,32], index: 0, kind: input, shape index: {}]   ;;  %s2091_s1 = inlined_call_operand.vmem [shape: f32[64,64], index: 1, kind: input, shape index: {}]   ;;  %s2092_s2 = inlined_call_operand.vmem [shape: f32[1,64], index: 2, kind: input, shape index: {}]   ;;  %s2093_s3 = inlined_call_operand.vmem [shape: s32[32,1], index: 3, kind: input, shape index: {}]   ;;  %s2094_s4 = inlined_call_operand.vmem [shape: s32[2,16], index: 4, kind: input, shape index: {}]   ;;  %s2095_s5 = inlined_call_operand.vmem [shape: f32[32,32], index: 5, kind: input, shape index: {}]   ;;  %s2096_s6 = inlined_call_operand.vmem [shape: f32[3,32,32], index: 6, kind: input, shape index: {}]   ;;  %s2097_s7 = inlined_call_operand.vmem [shape: f32[3,32,32], index: 7, kind: input, shape index: {}]   ;;  %s2098_s8 = inlined_call_operand.vmem [shape: f32[3,1,32], index: 8, kind: input, shape index: {}]   ;;  %s2099_s9 = inlined_call_operand.vmem [shape: f32[3,1,32], index: 9, kind: input, shape index: {}]   ;;  %s2100_s10 = inlined_call_operand.vmem [shape: f32[1,32], index: 10, kind: input, shape index: {}]   ;;  %s2101_s11 = inlined_call_operand.<no memory space> [shape: f32[1,1], index: 11, kind: input, shape index: {}]   ;;  %s2102_s12 = inlined_call_operand.hbm [shape: f32[1,16], index: 12, kind: output, shape index: {}]  }
   0x1   :  { %v17_v0 = vstv %s2101_s11 }
   0x2   :  { %18 = vst [vmem:[#allocation2] sm:$0x1] %v17_v0 }
   0x3   :  { %v52_v1 = vld [vmem:[%s2093_s3] sm:$0xff]  ;;  %v54_v2 = vld [vmem:[%s2093_s3 + $0x10] sm:$0xff]  ;;  %v1293_v3 = vmov 0  }
   0x4   :  { %1201 = vset.pattern.permute.xlu0 %v1293_v3  ;;  %1202 = vset.pattern.permute.xlu1 %v1293_v3 }
   0x5   :  { %59 = vperm.xlu0 %1201, %v52_v1   ;;  %65 = vperm.xlu1 %1202, %v54_v2  }
   0x6   :  { %19 = vsyncpa [#allocation4], 0  ;;  %v53_v4 = vld [vmem:[%s2093_s3 + $0x8] sm:$0xff]  ;;  %v55_v5 = vld [vmem:[%s2093_s3 + $0x18] sm:$0xff]  ;;  %vm90_vm0 = vcmask 523264   ;;  %v2103_v17 = vlaneseq  ;;  %v1294_v21 = vmov 0.0  }
   0x7   :  { %v1380_v6 = vld [vmem:[%s2090_s0 + $0x38] sm:$0xff]  ;;  %v1385_v7 = vld [vmem:[%s2090_s0 + $0x30] sm:$0xff]  ;;  %v1391_v8 = vld [vmem:[%s2090_s0 + $0x28] sm:$0xff]  ;;  %vm144_vm5 = vcmask 261120   ;;  %s1067_s24 = sshll.u32 %s2102_s12, 4  ;;  %s1068_s24 = int_to_ptr.hbm [resolvable:$true] %s1067_s24 }
   0x8   :  { %111 = vmatpush.msra.mxu0 %v1380_v6  ;;  %v1397_v9 = vld [vmem:[%s2090_s0 + $0x20] sm:$0xff]  ;;  %v584_v10 = vld [vmem:[%s2091_s1 + $0x28] sm:$0xff]  ;;  %v1406_v11 = vld [vmem:[%s2090_s0 + $0x18] sm:$0xff]  ;;  %v57_v18 = vand.u32 127, %v2103_v17 }
   0x9   :  { %v602_v12 = vsel %vm90_vm0, %v584_v10, 0.0  ;;  %v1028_v13 = vld [vmem:[#allocation2] sm:$0x1]  ;;  %v1414_v14 = vld [vmem:[%s2090_s0 + $0x10] sm:$0xff]  ;;  %v1420_v15 = vld [vmem:[%s2090_s0 + $0x8] sm:$0xff] }
   0xa   :  { %112 = vmatpush.msra.mxu0 %v1385_v7  ;;  %v1426_v16 = vld [vmem:[%s2090_s0] sm:$0xff]  ;;  %v189_v33 = vld [vmem:[%s2097_s7 + $0x18] sm:$0xff]  ;;  %v188_v34 = vld [vmem:[%s2097_s7 + $0x10] sm:$0xff] }
   0xb   :  { %v1203_v19 = vld [vmem:[%s2092_s2] ss:$0 sm:$0xff]  ;;  %218 = vmatpush.msra.mxu2 %v189_v33  ;;  %v187_v35 = vld [vmem:[%s2097_s7 + $0x8] sm:$0xff]  ;;  %v139_v36 = vld [vmem:[%s2096_s6 + $0x18] sm:$0xff] }
   0xc   :  { %113 = vmatpush.msra.mxu0 %v1391_v8  ;;  %169 = vmatpush.msra.mxu1 %v139_v36  ;;  %v138_v37 = vld [vmem:[%s2096_s6 + $0x10] sm:$0xff]  ;;  %v186_v38 = vld [vmem:[%s2097_s7] sm:$0xff]  ;;  %v137_v39 = vld [vmem:[%s2096_s6 + $0x8] sm:$0xff] }
   0xd   :  { %62 = vperm.xlu0 %1201, %v53_v4   ;;  %68 = vperm.xlu1 %1202, %v55_v5   ;;  %v1461_v40 = vld [vmem:[%s2095_s5] sm:$0xff]  ;;  %v1113_v41 = vld [vmem:[%s2096_s6 + $0x58] sm:$0xff]  ;;  %v1112_v42 = vld [vmem:[%s2096_s6 + $0x50] sm:$0xff] }
   0xe   :  { %114 = vmatpush.msra.mxu0 %v1397_v9  ;;  %219 = vmatpush.msra.mxu2 %v188_v34  ;;  %v1111_v43 = vld [vmem:[%s2096_s6 + $0x48] sm:$0xff]  ;;  %v1484_v45 = vld [vmem:[%s2095_s5 + $0x10] sm:$0xff]  ;;  %v1491_v46 = vld [vmem:[%s2095_s5 + $0x18] sm:$0xff] }
   0xf   :  { %1193 = vmatpush.msra.mxu3 %v139_v36  ;;  %170 = vmatpush.msra.mxu1 %v138_v37  ;;  %v1477_v44 = vld [vmem:[%s2095_s5 + $0x8] sm:$0xff]  ;;  %v136_v47 = vld [vmem:[%s2096_s6] sm:$0xff]  ;;  %v1095_v49 = vld [vmem:[%s2096_s6 + $0x38] sm:$0xff]  ;;  %s1296_s5 = smov [#allocation3]  }
  0x10   :  { %115 = vmatpush.msra.mxu0 %v1406_v11  ;;  %220 = vmatpush.msra.mxu2 %v187_v35  ;;  %v1110_v48 = vld [vmem:[%s2096_s6 + $0x40] sm:$0xff]  ;;  %v1094_v50 = vld [vmem:[%s2096_s6 + $0x30] sm:$0xff]  ;;  %v1104_v51 = vld [vmem:[%s2097_s7 + $0x38] sm:$0xff]  ;;  %s1065_s21 = sshll.u32 %s1296_s5, 4  ;;  %s1066_s21 = int_to_ptr.vmem [resolvable:$true] %s1065_s21 }
  0x11   :  { %1194 = vmatpush.msra.mxu3 %v138_v37  ;;  %171 = vmatpush.msra.mxu1 %v137_v39  ;;  %v1093_v52 = vld [vmem:[%s2096_s6 + $0x28] sm:$0xff]  ;;  %v1092_v53 = vld [vmem:[%s2096_s6 + $0x20] sm:$0xff]  ;;  %v1103_v55 = vld [vmem:[%s2097_s7 + $0x30] sm:$0xff] }
  0x12   :  { %116 = vmatpush.msra.mxu0 %v1414_v14  ;;  %221 = vmatpush.msra.mxu2 %v186_v38  ;;  %v1102_v56 = vld [vmem:[%s2097_s7 + $0x28] sm:$0xff]  ;;  %v1101_v57 = vld [vmem:[%s2097_s7 + $0x20] sm:$0xff]  ;;  %v1122_v61 = vld [vmem:[%s2097_s7 + $0x58] sm:$0xff] }
  0x13   :  { %1088 = vmatmul.msk.f32.vlgmr.msra.gmra.mxu2 %vm144_vm5, %v1461_v40  ;;  %1195 = vmatpush.msra.mxu3 %v137_v39  ;;  %v1121_v62 = vld [vmem:[%s2097_s7 + $0x50] sm:$0xff]  ;;  %v1120_v63 = vld [vmem:[%s2097_s7 + $0x48] sm:$0xff]  ;;  %v1119_v0 = vld [vmem:[%s2097_s7 + $0x40] sm:$0xff] }
  0x14   :  { %117 = vmatpush.msra.mxu0 %v1420_v15  ;;  %335 = vmatpush.msrb.mxu2 %v1113_v41  ;;  %v1581_v41 = vld [vmem:[%s2091_s1 + $0x30] sm:$0xff] }
  0x15   :  { %172 = vmatpush.msra.mxu1 %v136_v47  ;;  %1196 = vmatpush.msra.mxu3 %v136_v47  ;;  %v1207_v47 = vld [vmem:[%s2098_s8 + $0x1] ss:$0 sm:$0xff] }
  0x16   :  { %118 = vmatpush.msra.mxu0 %v1426_v16  ;;  %336 = vmatpush.msrb.mxu2 %v1112_v42  ;;  %v605_v42 = vsel %vm90_vm0, %v1581_v41, 0.0 }
  0x17   :  { %257 = vmatpush.msrb.mxu3 %v1095_v49  ;;  %296 = vmatpush.msrb.mxu1 %v1104_v51 }
  0x18   :  { %337 = vmatpush.msrb.mxu2 %v1111_v43 }
  0x19   :  { %258 = vmatpush.msrb.mxu3 %v1094_v50  ;;  %297 = vmatpush.msrb.mxu1 %v1103_v55 }
  0x1a   :  { %338 = vmatpush.msrb.mxu2 %v1110_v48  ;;  %v1208_v48 = vld [vmem:[%s2099_s9 + $0x1] ss:$0 sm:$0xff] }
  0x1b   :  { %1089 = vmatmul.msk.f32.gmra.mxu2 %vm144_vm5, %v1477_v44  ;;  %259 = vmatpush.msrb.mxu3 %v1093_v52 }
  0x1c   :  { %298 = vmatpush.msrb.mxu1 %v1102_v56 }
  0x1d   :  { %260 = vmatpush.msrb.mxu3 %v1092_v53 }
  0x1e   :  { %299 = vmatpush.msrb.mxu1 %v1101_v57 }
  0x23   :  { %1090 = vmatmul.msk.f32.gmra.mxu2 %vm144_vm5, %v1484_v45 }
  0x2b   :  { %1091 = vmatmul.msk.f32.gmra.mxu2 %vm144_vm5, %v1491_v46 }
  0x37   :  { %603 = vadd.xlane.f32.xlu0 %v602_v12 }
  0x4b   :  { %1031 = vperm.xlu0 %1201, %v1028_v13   ;;  %v1204_v13 = vld [vmem:[%s2099_s9] ss:$0 sm:$0xff] }
  0x77   :  { %v60_v20 = vpop.permute.xlu0 %59  ;;  %v66_v24 = vpop.permute.xlu1 %65 }
  0x78   :  { %vm70_vm1 = vcmp.eq.s32.totalorder %v57_v18, %v60_v20  ;;  %vm72_vm3 = vcmp.eq.s32.totalorder %v57_v18, %v66_v24 }
  0x79   :  { %v1076_v22 = vsel %vm70_vm1, 1.0, %v1294_v21  ;;  %v1078_v28 = vsel %vm72_vm3, 1.0, %v1294_v21 }
  0x7a   :  { %v86_v23 = vmul.f32 %v1203_v19, %v1076_v22  ;;  %v88_v29 = vmul.f32 %v1203_v19, %v1078_v28 }
  0x7c   :  { %1080 = vmatmul.msk.f32.vlgmr.msra.gmra.mxu0 %vm90_vm0, %v86_v23 }
  0x7f   :  { %v63_v25 = vpop.permute.xlu0 %62  ;;  %v69_v30 = vpop.permute.xlu1 %68 }
  0x80   :  { %vm71_vm2 = vcmp.eq.s32.totalorder %v57_v18, %v63_v25  ;;  %vm73_vm4 = vcmp.eq.s32.totalorder %v57_v18, %v69_v30  ;;  %v1205_v18 = vld [vmem:[%s2098_s8] ss:$0 sm:$0xff] }
  0x81   :  { %v1077_v26 = vsel %vm71_vm2, 1.0, %v1294_v21  ;;  %v1079_v31 = vsel %vm73_vm4, 1.0, %v1294_v21 }
  0x82   :  { %v87_v27 = vmul.f32 %v1203_v19, %v1077_v26  ;;  %v89_v32 = vmul.f32 %v1203_v19, %v1079_v31  ;;  %v1574_v26 = vld [vmem:[%s2091_s1 + $0x38] sm:$0xff] }
  0x84   :  { %1081 = vmatmul.msk.f32.gmra.mxu0 %vm90_vm0, %v87_v27  ;;  %v608_v27 = vsel %vm90_vm0, %v1574_v26, 0.0 }
  0x85   :  { %609 = vadd.xlane.f32.xlu2 %v608_v27 }
  0x8c   :  { %1082 = vmatmul.msk.f32.gmra.mxu0 %vm90_vm0, %v88_v29 }
  0x8d   :  { %606 = vadd.xlane.f32.xlu2 %v605_v42 }
  0x94   :  { %1083 = vmatmul.msk.f32.gmra.mxu0 %vm90_vm0, %v89_v32 }
  0x96   :  { %v223_v1 = vpop.f32.mrf.mxu2 }
  0x97   :  { %v224_v20 = vadd.f32 %v1204_v13, %v223_v1 }
  0x9e   :  { %v226_v3 = vpop.f32.mrf.mxu2 }
  0x9f   :  { %v227_v22 = vadd.f32 %v1204_v13, %v226_v3 }
  0xa6   :  { %v229_v12 = vpop.f32.mrf.mxu2 }
  0xa7   :  { %v230_v24 = vadd.f32 %v1204_v13, %v229_v12 }
  0xae   :  { %v232_v31 = vpop.f32.mrf.mxu2 }
  0xaf   :  { %v233_v33 = vadd.f32 %v1204_v13, %v232_v31 }
  0xf9   :  { %v120_v54 = vpop.f32.mrf.mxu0 }
  0xfa   :  { %1084 = vmatmul.msk.f32.vlgmr.msra.gmra.mxu1 %vm144_vm5, %v120_v54  ;;  %1115 = vmatmul.msk.f32.vlgmr.msrb.gmra.mxu2 %vm144_vm5, %v120_v54 }
 0x101   :  { %v123_v58 = vpop.f32.mrf.mxu0 }
 0x102   :  { %1085 = vmatmul.msk.f32.gmra.mxu1 %vm144_vm5, %v123_v58  ;;  %1116 = vmatmul.msk.f32.gmra.mxu2 %vm144_vm5, %v123_v58 }
 0x109   :  { %v126_v59 = vpop.f32.mrf.mxu0 }
 0x10a   :  { %1086 = vmatmul.msk.f32.vlgmr.msra.gmra.mxu3 %vm144_vm5, %v126_v59  ;;  %1117 = vmatmul.msk.f32.gmra.mxu2 %vm144_vm5, %v126_v59 }
 0x10b   :  { %1106 = vmatmul.msk.f32.vlgmr.msrb.gmra.mxu1 %vm144_vm5, %v1461_v40  ;;  %374 = vmatpush.msra.mxu3 %v1122_v61 }
 0x10d   :  { %375 = vmatpush.msra.mxu3 %v1121_v62 }
 0x10f   :  { %376 = vmatpush.msra.mxu3 %v1120_v63 }
 0x111   :  { %v129_v60 = vpop.f32.mrf.mxu0  ;;  %377 = vmatpush.msra.mxu3 %v1119_v0 }
 0x112   :  { %1087 = vmatmul.msk.f32.gmra.mxu3 %vm144_vm5, %v129_v60  ;;  %1118 = vmatmul.msk.f32.gmra.mxu2 %vm144_vm5, %v129_v60 }
 0x113   :  { %1107 = vmatmul.msk.f32.gmra.mxu1 %vm144_vm5, %v1477_v44 }
 0x11a   :  { %1097 = vmatmul.msk.f32.vlgmr.msrb.gmra.mxu3 %vm144_vm5, %v120_v54 }
 0x11b   :  { %1108 = vmatmul.msk.f32.gmra.mxu1 %vm144_vm5, %v1484_v45 }
 0x122   :  { %1098 = vmatmul.msk.f32.gmra.mxu3 %vm144_vm5, %v123_v58  ;;  %v1594_v58 = vld [vmem:[%s2091_s1 + $0x18] sm:$0xff] }
 0x123   :  { %1109 = vmatmul.msk.f32.gmra.mxu1 %vm144_vm5, %v1491_v46  ;;  %v596_v61 = vsel %vm90_vm0, %v1594_v58, 0.0 }
 0x124   :  { %597 = vadd.xlane.f32.xlu2 %v596_v61 }
 0x12a   :  { %1099 = vmatmul.msk.f32.gmra.mxu3 %vm144_vm5, %v126_v59 }
 0x132   :  { %1100 = vmatmul.msk.f32.gmra.mxu3 %vm144_vm5, %v129_v60 }
 0x13a   :  { %1124 = vmatmul.msk.f32.vlgmr.msra.gmra.mxu3 %vm144_vm5, %v1461_v40 }
 0x142   :  { %1125 = vmatmul.msk.f32.gmra.mxu3 %vm144_vm5, %v1477_v44 }
 0x14a   :  { %1126 = vmatmul.msk.f32.gmra.mxu3 %vm144_vm5, %v1484_v45 }
 0x152   :  { %1127 = vmatmul.msk.f32.gmra.mxu3 %vm144_vm5, %v1491_v46 }
 0x177   :  { %v174_v2 = vpop.f32.mrf.mxu1 }
 0x178   :  { %v175_v21 = vadd.f32 %v1205_v18, %v174_v2 }
 0x17a   :  { %v391_v28 = vadd.f32 %v224_v20, %v175_v21 }
 0x17c   :  { %v1128_v36 = vmul.f32 -1.442695, %v391_v28 }
 0x17d   :  { %v1600_v1 = vpop.f32.mrf.mxu2 }
 0x17e   :  { %1210 = vpow2.f32 %v1128_v36  ;;  %v1630_v36 = vld [vmem:[%s2091_s1 + $0x8] sm:$0xff] }
 0x17f   :  { %v177_v4 = vpop.f32.mrf.mxu1 }
 0x180   :  { %v178_v23 = vadd.f32 %v1205_v18, %v177_v4 }
 0x182   :  { %v392_v32 = vadd.f32 %v227_v22, %v178_v23  ;;  %v1614_v22 = vld [vmem:[%s2091_s1 + $0x10] sm:$0xff] }
 0x184   :  { %v1129_v37 = vmul.f32 -1.442695, %v392_v32  ;;  %v1211_v53 = vpop.eup %1210 }
 0x185   :  { %v1598_v62 = vadd.f32 1.0, %v1211_v53 }
 0x186   :  { %1212 = vpow2.f32 %v1129_v37 }
 0x187   :  { %vm416_vm6 = vweird.f32 %v1598_v62 }
 0x188   :  { %v301_v10 = vpop.f32.mrf.mxu1 }
 0x189   :  { %v302_v52 = vadd.f32 %v1208_v48, %v301_v10 }
 0x18c   :  { %v1213_v56 = vpop.eup %1212 }
 0x18d   :  { %v180_v5 = vpop.f32.mrf.mxu3  ;;  %v1602_v2 = vadd.f32 1.0, %v1213_v56 }
 0x18e   :  { %v181_v25 = vadd.f32 %v1205_v18, %v180_v5 }
 0x18f   :  { %vm431_vm9 = vweird.f32 %v1602_v2 }
 0x190   :  { %v304_v30 = vpop.f32.mrf.mxu1  ;;  %v393_v34 = vadd.f32 %v230_v24, %v181_v25  ;;  %v593_v24 = vsel %vm90_vm0, %v1614_v22, 0.0 }
 0x191   :  { %v305_v55 = vadd.f32 %v1208_v48, %v304_v30  ;;  %594 = vadd.xlane.f32.xlu2 %v593_v24  ;;  %v343_v30 = vpop.f32.mrf.mxu2 }
 0x192   :  { %v1130_v38 = vmul.f32 -1.442695, %v393_v34 }
 0x194   :  { %1214 = vpow2.f32 %v1130_v38 }
 0x195   :  { %v183_v19 = vpop.f32.mrf.mxu3 }
 0x196   :  { %v184_v35 = vadd.f32 %v1205_v18, %v183_v19 }
 0x198   :  { %v394_v39 = vadd.f32 %v233_v33, %v184_v35  ;;  %v307_v50 = vpop.f32.mrf.mxu1 }
 0x199   :  { %v308_v57 = vadd.f32 %v1208_v48, %v307_v50 }
 0x19a   :  { %v1131_v49 = vmul.f32 -1.442695, %v394_v39  ;;  %v1215_v59 = vpop.eup %1214  ;;  %v590_v39 = vsel %vm90_vm0, %v1630_v36, 0.0 }
 0x19b   :  { %v1604_v4 = vadd.f32 1.0, %v1215_v59  ;;  %591 = vadd.xlane.f32.xlu2 %v590_v39 }
 0x19c   :  { %1216 = vpow2.f32 %v1131_v49 }
 0x19d   :  { %v262_v29 = vpop.f32.mrf.mxu3  ;;  %1218 = vrcp.f32 %v1598_v62  ;;  %vm446_vm14 = vweird.f32 %v1604_v4 }
 0x19e   :  { %v263_v51 = vadd.f32 %v1207_v47, %v262_v29  ;;  %1220 = vrcp.f32 %v1602_v2 }
 0x19f   :  { %1222 = vrcp.f32 %v1604_v4 }
 0x1a0   :  { %v471_v63 = vadd.f32 %v302_v52, %v263_v51  ;;  %v310_v12 = vpop.f32.mrf.mxu1  ;;  %v1651_v52 = vld [vmem:[%s2091_s1] sm:$0xff] }
 0x1a1   :  { %v311_v21 = vadd.f32 %v1208_v48, %v310_v12  ;;  %v587_v61 = vsel %vm90_vm0, %v1651_v52, 0.0 }
 0x1a2   :  { %v1217_v10 = vpop.eup %1216  ;;  %v1132_v13 = vmul.f32 -1.442695, %v471_v63 }
 0x1a3   :  { %v1609_v20 = vadd.f32 1.0, %v1217_v10  ;;  %v1618_v27 = vpop.eup %1218  ;;  %588 = vadd.xlane.f32.xlu2 %v587_v61 }
 0x1a4   :  { %v1621_v29 = vpop.eup %1220  ;;  %v412_v49 = vmul.f32 %v1618_v27, %v1598_v62  ;;  %vm417_vm8 = vweird.f32 %v1618_v27 }
 0x1a5   :  { %v265_v43 = vpop.f32.mrf.mxu3  ;;  %v1623_v31 = vpop.eup %1222  ;;  %v427_v35 = vmul.f32 %v1621_v29, %v1602_v2  ;;  %vm432_vm7 = vweird.f32 %v1621_v29  ;;  %vm461_vm2 = vweird.f32 %v1609_v20  ;;  %vm1750_vm3 = vmor %vm416_vm6, %vm417_vm8 }
 0x1a6   :  { %v266_v54 = vadd.f32 %v1207_v47, %v265_v43  ;;  %vm447_vm10 = vweird.f32 %v1623_v31  ;;  %vm1709_vm12 = vmor %vm431_vm9, %vm432_vm7 }
 0x1a7   :  { %v428_v51 = vsub.f32 1.0, %v427_v35  ;;  %vm1731_vm15 = vmor %vm446_vm14, %vm447_vm10 }
 0x1a8   :  { %v472_v3 = vadd.f32 %v305_v55, %v266_v54  ;;  %v1658_v55 = vld [vmem:[%s2098_s8 + $0x2] ss:$0 sm:$0xff] }
 0x1a9   :  { %v429_v63 = vmul.f32 %v1621_v29, %v428_v51  ;;  %v1672_v10 = vadd.f32 %v1658_v55, %v1600_v1  ;;  %v452_v1 = vand.u32 2147483648, %v1604_v4 }
 0x1aa   :  { %v1133_v19 = vmul.f32 -1.442695, %v472_v3 }
 0x1ab   :  { %v430_v24 = vadd.f32 %v1621_v29, %v429_v63 }
 0x1ad   :  { %v268_v60 = vpop.f32.mrf.mxu3 }
 0x1ae   :  { %v269_v0 = vadd.f32 %v1207_v47, %v268_v60  ;;  %v413_v60 = vsub.f32 1.0, %v412_v49 }
 0x1b0   :  { %v473_v5 = vadd.f32 %v308_v57, %v269_v0  ;;  %v346_v57 = vpop.f32.mrf.mxu2  ;;  %v422_v0 = vand.u32 2147483648, %v1598_v62 }
 0x1b2   :  { %v1134_v18 = vmul.f32 -1.442695, %v473_v5 }
 0x1b4   :  { %1224 = vpow2.f32 %v1134_v18  ;;  %v414_v18 = vmul.f32 %v1618_v27, %v413_v60 }
 0x1b5   :  { %v271_v23 = vpop.f32.mrf.mxu3  ;;  %1226 = vpow2.f32 %v1132_v13  ;;  %v1676_v13 = vadd.f32 %v1658_v55, %v343_v30  ;;  %v423_v30 = vor.u32 1.1754944e-38, %v422_v0 }
 0x1b6   :  { %v272_v25 = vadd.f32 %v1207_v47, %v271_v23  ;;  %1228 = vpow2.f32 %v1133_v19  ;;  %v442_v47 = vmul.f32 %v1623_v31, %v1604_v4  ;;  %v420_v19 = vand.u32 2147483647, %v1598_v62 }
 0x1b7   :  { %1230 = vrcp.f32 %v1609_v20  ;;  %v415_v39 = vadd.f32 %v1618_v27, %v414_v18 }
 0x1b8   :  { %v474_v28 = vadd.f32 %v311_v21, %v272_v25  ;;  %v443_v56 = vsub.f32 1.0, %v442_v47  ;;  %v435_v21 = vand.u32 2147483647, %v1602_v2  ;;  %vm1703_vm11 = vcmp.eq.f32.partialorder %v420_v19, 8.507059e+37  ;;  %v349_v61 = vpop.f32.mrf.mxu2 }
 0x1b9   :  { %v467_v19 = vand.u32 2147483648, %v1609_v20 }
 0x1ba   :  { %v1135_v32 = vmul.f32 -1.442695, %v474_v28  ;;  %v1225_v33 = vpop.eup %1224  ;;  %v444_v12 = vmul.f32 %v1623_v31, %v443_v56  ;;  %v1690_v28 = vadd.f32 %v1658_v55, %v346_v57  ;;  %vm1713_vm13 = vcmp.eq.f32.partialorder %v435_v21, 8.507059e+37 }
 0x1bb   :  { %v1227_v34 = vpop.eup %1226  ;;  %v1638_v43 = vadd.f32 1.0, %v1225_v33  ;;  %v450_v56 = vand.u32 2147483647, %v1604_v4  ;;  %v453_v57 = vor.u32 1.1754944e-38, %v452_v1  ;;  %v465_v1 = vand.u32 2147483647, %v1609_v20 }
 0x1bc   :  { %1232 = vpow2.f32 %v1135_v32  ;;  %v1229_v37 = vpop.eup %1228  ;;  %v1642_v48 = vadd.f32 1.0, %v1227_v34  ;;  %v437_v34 = vand.u32 2147483648, %v1602_v2  ;;  %v445_v35 = vadd.f32 %v1623_v31, %v444_v12 }
 0x1bd   :  { %v1632_v38 = vpop.f32.mrf.mxu3  ;;  %v1636_v42 = vpop.eup %1230  ;;  %v1646_v50 = vadd.f32 1.0, %v1229_v37  ;;  %1234 = vrcp.f32 %v1638_v43  ;;  %vm451_vm4 = vcmp.eq.f32.partialorder %v450_v56, 8.507059e+37  ;;  %vm466_vm6 = vcmp.eq.f32.partialorder %v465_v1, 8.507059e+37 }
 0x1be   :  { %v457_v53 = vmul.f32 %v1636_v42, %v1609_v20  ;;  %1236 = vrcp.f32 %v1642_v48  ;;  %vm462_vm1 = vweird.f32 %v1636_v42  ;;  %v449_v18 = vsel %vm1731_vm15, %v1623_v31, %v445_v35 }
 0x1bf   :  { %1238 = vrcp.f32 %v1646_v50  ;;  %v419_v31 = vsel %vm1750_vm3, %v1618_v27, %v415_v39  ;;  %v438_v35 = vor.u32 1.1754944e-38, %v437_v34  ;;  %vm463_vm7 = vmor %vm461_vm2, %vm462_vm1  ;;  %v454_v62 = vsel %vm451_vm4, %v453_v57, %v449_v18 }
 0x1c0   :  { %v458_v5 = vsub.f32 1.0, %v457_v53  ;;  %v1209_v53 = vld [vmem:[%s2099_s9 + $0x2] ss:$0 sm:$0xff]  ;;  %v424_v39 = vsel %vm1703_vm11, %v423_v30, %v419_v31  ;;  %vm511_vm8 = vweird.f32 %v1646_v50  ;;  %v515_v2 = vand.u32 2147483647, %v1646_v50 }
 0x1c1   :  { %v380_v20 = vadd.f32 %v1209_v53, %v1632_v38  ;;  %vm526_vm14 = vweird.f32 %v1638_v43  ;;  %v532_v18 = vand.u32 2147483648, %v1638_v43 }
 0x1c2   :  { %v1233_v54 = vpop.eup %1232  ;;  %v459_v32 = vmul.f32 %v1636_v42, %v458_v5 }
 0x1c3   :  { %v1662_v59 = vadd.f32 1.0, %v1233_v54  ;;  %v1681_v23 = vpop.eup %1234  ;;  %v434_v54 = vsel %vm1709_vm12, %v1621_v29, %v430_v24  ;;  %vm496_vm12 = vweird.f32 %v1642_v48  ;;  %v551_v57 = vmul.f32 %v424_v39, %v380_v20 }
 0x1c4   :  { %v1687_v25 = vpop.eup %1236  ;;  %v522_v51 = vmul.f32 %v1681_v23, %v1638_v43  ;;  %v460_v5 = vadd.f32 %v1636_v42, %v459_v32  ;;  %vm527_vm11 = vweird.f32 %v1681_v23 }
 0x1c5   :  { %1240 = vrcp.f32 %v1662_v59  ;;  %v382_v3 = vpop.f32.mrf.mxu3  ;;  %v1694_v33 = vpop.eup %1238  ;;  %v492_v4 = vmul.f32 %v1687_v25, %v1642_v48  ;;  %vm497_vm9 = vweird.f32 %v1687_v25  ;;  %vm541_vm15 = vweird.f32 %v1662_v59  ;;  %vm1787_vm1 = vmor %vm526_vm14, %vm527_vm11 }
 0x1c6   :  { %v507_v29 = vmul.f32 %v1694_v33, %v1646_v50  ;;  %v383_v24 = vadd.f32 %v1209_v53, %v382_v3  ;;  %v523_v49 = vsub.f32 1.0, %v522_v51  ;;  %v464_v0 = vsel %vm463_vm7, %v1636_v42, %v460_v5 }
 0x1c7   :  { %v493_v3 = vsub.f32 1.0, %v492_v4  ;;  %v439_v51 = vsel %vm1713_vm13, %v438_v35, %v434_v54  ;;  %vm512_vm10 = vweird.f32 %v1694_v33  ;;  %v555_v21 = vadd.f32 %v551_v57, %v1672_v10 }
 0x1c8   :  { %v508_v17 = vsub.f32 1.0, %v507_v29  ;;  %v524_v34 = vmul.f32 %v1681_v23, %v523_v49  ;;  %vm1810_vm3 = vmor %vm511_vm8, %vm512_vm10  ;;  %v502_v35 = vand.u32 2147483648, %v1642_v48  ;;  %vm516_vm8 = vcmp.eq.f32.partialorder %v515_v2, 8.507059e+37 }
 0x1c9   :  { %v494_v54 = vmul.f32 %v1687_v25, %v493_v3 }
 0x1ca   :  { %v509_v42 = vmul.f32 %v1694_v33, %v508_v17  ;;  %v525_v17 = vadd.f32 %v1681_v23, %v524_v34 }
 0x1cb   :  { %v1700_v37 = vpop.eup %1240  ;;  %v495_v49 = vadd.f32 %v1687_v25, %v494_v54 }
 0x1cc   :  { %v537_v60 = vmul.f32 %v1700_v37, %v1662_v59  ;;  %vm542_vm13 = vweird.f32 %v1700_v37 }
 0x1cd   :  { %v385_v63 = vpop.f32.mrf.mxu3  ;;  %vm1794_vm2 = vmor %vm541_vm15, %vm542_vm13 }
 0x1ce   :  { %v386_v12 = vadd.f32 %v1209_v53, %v385_v63  ;;  %v538_v32 = vsub.f32 1.0, %v537_v60  ;;  %v350_v63 = vadd.f32 %v1658_v55, %v349_v61  ;;  %v468_v60 = vor.u32 1.1754944e-38, %v467_v19 }
 0x1cf   :  { %v552_v61 = vmul.f32 %v439_v51, %v383_v24  ;;  %v510_v19 = vadd.f32 %v1694_v33, %v509_v42 }
 0x1d0   :  { %v553_v55 = vmul.f32 %v454_v62, %v386_v12  ;;  %v539_v27 = vmul.f32 %v1700_v37, %v538_v32  ;;  %v469_v56 = vsel %vm466_vm6, %v468_v60, %v464_v0  ;;  %v547_v12 = vand.u32 2147483648, %v1662_v59  ;;  %vm498_vm6 = vmor %vm496_vm12, %vm497_vm9 }
 0x1d1   :  { %v556_v5 = vadd.f32 %v552_v61, %v1676_v13  ;;  %v530_v13 = vand.u32 2147483647, %v1638_v43  ;;  %v517_v32 = vand.u32 2147483648, %v1646_v50  ;;  %v529_v43 = vsel %vm1787_vm1, %v1681_v23, %v525_v17  ;;  %v1826_v50 = vld [vmem:[%s2091_s1 + $0x20] sm:$0xff] }
 0x1d2   :  { %v557_v47 = vadd.f32 %v553_v55, %v1690_v28  ;;  %v540_v29 = vadd.f32 %v1700_v37, %v539_v27  ;;  %v545_v28 = vand.u32 2147483647, %v1662_v59  ;;  %v548_v10 = vor.u32 1.1754944e-38, %v547_v12 }
 0x1d3   :  { %vm531_vm7 = vcmp.eq.f32.partialorder %v530_v13, 8.507059e+37  ;;  %v514_v23 = vsel %vm1810_vm3, %v1694_v33, %v510_v19  ;;  %v518_v3 = vor.u32 1.1754944e-38, %v517_v32  ;;  %v499_v20 = vsel %vm498_vm6, %v1687_v25, %v495_v49 }
 0x1d4   :  { %1242 = vtanh.f32 %v557_v47  ;;  %v544_v59 = vsel %vm1794_vm2, %v1700_v37, %v540_v29  ;;  %vm546_vm4 = vcmp.eq.f32.partialorder %v545_v28, 8.507059e+37  ;;  %v500_v37 = vand.u32 2147483647, %v1642_v48 }
 0x1d5   :  { %v388_v38 = vpop.f32.mrf.mxu3  ;;  %1244 = vtanh.f32 %v556_v5  ;;  %v549_v62 = vsel %vm546_vm4, %v548_v10, %v544_v59  ;;  %v599_v33 = vsel %vm90_vm0, %v1826_v50, 0.0  ;;  %v519_v55 = vsel %vm516_vm8, %v518_v3, %v514_v23 }
 0x1d6   :  { %v389_v30 = vadd.f32 %v1209_v53, %v388_v38  ;;  %v503_v60 = vor.u32 1.1754944e-38, %v502_v35  ;;  %600 = vadd.xlane.f32.xlu1 %v599_v33  ;;  %v566_v27 = vsub.f32 1.0, %v549_v62  ;;  %vm501_vm10 = vcmp.eq.f32.partialorder %v500_v37, 8.507059e+37 }
 0x1d7   :  { %v574_v38 = vmul.f32 %v549_v62, %v1491_v46  ;;  %v564_v2 = vsub.f32 1.0, %v519_v55  ;;  %v572_v29 = vmul.f32 %v519_v55, %v1477_v44 }
 0x1d8   :  { %v554_v4 = vmul.f32 %v469_v56, %v389_v30  ;;  %v504_v39 = vsel %vm501_vm10, %v503_v60, %v499_v20 }
 0x1d9   :  { %v563_v30 = vsub.f32 1.0, %v504_v39  ;;  %v571_v12 = vmul.f32 %v504_v39, %v1461_v40 }
 0x1da   :  { %v558_v24 = vadd.f32 %v554_v4, %v350_v63  ;;  %v533_v63 = vor.u32 1.1754944e-38, %v532_v18  ;;  %v1243_v51 = vpop.eup %1242 }
 0x1db   :  { %v1245_v61 = vpop.eup %1244 }
 0x1dc   :  { %1246 = vtanh.f32 %v558_v24  ;;  %v534_v0 = vsel %vm531_vm7, %v533_v63, %v529_v43  ;;  %v568_v47 = vmul.f32 %v1245_v61, %v564_v2 }
 0x1dd   :  { %1248 = vtanh.f32 %v555_v21  ;;  %v565_v34 = vsub.f32 1.0, %v534_v0  ;;  %v573_v57 = vmul.f32 %v534_v0, %v1484_v45 }
 0x1de   :  { %v576_v4 = vadd.f32 %v572_v29, %v568_v47 }
 0x1df   :  { %v569_v42 = vmul.f32 %v1243_v51, %v565_v34 }
 0x1e1   :  { %v577_v5 = vadd.f32 %v573_v57, %v569_v42 }
 0x1e2   :  { %v1247_v48 = vpop.eup %1246 }
 0x1e3   :  { %v570_v56 = vmul.f32 %v1247_v48, %v566_v27  ;;  %v1249_v54 = vpop.eup %1248 }
 0x1e4   :  { %v567_v17 = vmul.f32 %v1249_v54, %v563_v30 }
 0x1e5   :  { %v578_v25 = vadd.f32 %v574_v38, %v570_v56 }
 0x1e6   :  { %v575_v18 = vadd.f32 %v571_v12, %v567_v17  ;;  %v1295_v12 = vmov 1.0  }
 0x1e7   :  { %743 = vmatpush.msrb.mxu0 %v578_v25 }
 0x1e9   :  { %744 = vmatpush.msrb.mxu0 %v577_v5 }
 0x1eb   :  { %745 = vmatpush.msrb.mxu0 %v576_v4 }
 0x1ed   :  { %746 = vmatpush.msrb.mxu0 %v575_v18 }
 0x1ee   :  { %1136 = vmatmul.msk.f32.vlgmr.msrb.gmra.mxu0 %vm144_vm5, %v1426_v16  ;;  %v1851_v16 = vpop.xlane.xlu2 %609 }
 0x1ef   :  { %1250 = vrsqrt.f32 %v1851_v16  ;;  %vm695_vm9 = vweird.f32 %v1851_v16  ;;  %vm618_vm6 = vcmp.gt.f32.partialorder %v1851_v16, 0.0 }
 0x1f5   :  { %v1878_v46 = vpop.eup %1250 }
 0x1f6   :  { %1137 = vmatmul.msk.f32.gmra.mxu0 %vm144_vm5, %v1420_v15  ;;  %v1853_v15 = vpop.xlane.xlu2 %606  ;;  %v690_v21 = vmul.f32 %v1878_v46, %v1851_v16  ;;  %vm696_vm12 = vweird.f32 %v1878_v46 }
 0x1f7   :  { %vm685_vm11 = vweird.f32 %v1853_v15  ;;  %vm1934_vm1 = vmor %vm695_vm9, %vm696_vm12 }
 0x1f8   :  { %v691_v49 = vmul.f32 %v1878_v46, %v690_v21 }
 0x1fa   :  { %v692_v3 = vmul.f32 0.5, %v691_v49 }
 0x1fc   :  { %v693_v34 = vsub.f32 1.5, %v692_v3 }
 0x1fe   :  { %1138 = vmatmul.msk.f32.gmra.mxu0 %vm144_vm5, %v1414_v14  ;;  %v1857_v40 = vpop.xlane.xlu2 %597  ;;  %v694_v47 = vmul.f32 %v1878_v46, %v693_v34 }
 0x1ff   :  { %vm655_vm8 = vweird.f32 %v1857_v40 }
 0x200   :  { %v698_v49 = vsel %vm1934_vm1, %v1878_v46, %v694_v47 }
 0x206   :  { %1139 = vmatmul.msk.f32.gmra.mxu0 %vm144_vm5, %v1406_v11 }
 0x20e   :  { %1140 = vmatmul.msk.f32.gmra.mxu0 %vm144_vm5, %v1397_v9  ;;  %v1861_v9 = vpop.xlane.xlu2 %594 }
 0x20f   :  { %vm645_vm12 = vweird.f32 %v1861_v9 }
 0x216   :  { %1141 = vmatmul.msk.f32.gmra.mxu0 %vm144_vm5, %v1391_v8  ;;  %v1865_v8 = vpop.xlane.xlu2 %591 }
 0x21e   :  { %1142 = vmatmul.msk.f32.gmra.mxu0 %vm144_vm5, %v1385_v7  ;;  %v1867_v7 = vpop.xlane.xlu0 %603  ;;  %v1885_v13 = vpop.xlane.xlu2 %588 }
 0x21f   :  { %1252 = vrsqrt.f32 %v1867_v7  ;;  %vm675_vm14 = vweird.f32 %v1867_v7 }
 0x220   :  { %1254 = vrsqrt.f32 %v1853_v15 }
 0x225   :  { %v1880_v28 = vpop.eup %1252 }
 0x226   :  { %1143 = vmatmul.msk.f32.gmra.mxu0 %vm144_vm5, %v1380_v6  ;;  %v1883_v53 = vpop.eup %1254  ;;  %v670_v32 = vmul.f32 %v1880_v28, %v1867_v7  ;;  %vm676_vm15 = vweird.f32 %v1880_v28 }
 0x227   :  { %v680_v59 = vmul.f32 %v1883_v53, %v1853_v15  ;;  %vm686_vm13 = vweird.f32 %v1883_v53  ;;  %vm1946_vm7 = vmor %vm675_vm14, %vm676_vm15  ;;  %vm617_vm14 = vcmp.gt.f32.partialorder %v1853_v15, 0.0  ;;  %vm635_vm15 = vweird.f32 %v1865_v8 }
 0x228   :  { %v671_v35 = vmul.f32 %v1880_v28, %v670_v32  ;;  %vm1942_vm4 = vmor %vm685_vm11, %vm686_vm13  ;;  %vm616_vm13 = vcmp.gt.f32.partialorder %v1867_v7, 0.0 }
 0x229   :  { %v681_v23 = vmul.f32 %v1883_v53, %v680_v59 }
 0x22a   :  { %v672_v55 = vmul.f32 0.5, %v671_v35 }
 0x22b   :  { %v682_v60 = vmul.f32 0.5, %v681_v23 }
 0x22c   :  { %v673_v38 = vsub.f32 1.5, %v672_v55 }
 0x22d   :  { %v683_v42 = vsub.f32 1.5, %v682_v60 }
 0x22e   :  { %v674_v17 = vmul.f32 %v1880_v28, %v673_v38 }
 0x22f   :  { %v684_v4 = vmul.f32 %v1883_v53, %v683_v42 }
 0x230   :  { %v678_v23 = vsel %vm1946_vm7, %v1880_v28, %v674_v17  ;;  %v1984_v28 = vsel %vm618_vm6, %v698_v49, 0.0 }
 0x231   :  { %v688_v46 = vsel %vm1942_vm4, %v1883_v53, %v684_v4  ;;  %vm625_vm4 = vweird.f32 %v1885_v13 }
 0x249   :  { %v1873_v45 = vpop.xlane.xlu1 %600 }
 0x24a   :  { %1256 = vrsqrt.f32 %v1873_v45  ;;  %vm665_vm2 = vweird.f32 %v1873_v45 }
 0x24b   :  { %1258 = vrsqrt.f32 %v1857_v40 }
 0x24c   :  { %1260 = vrsqrt.f32 %v1861_v9 }
 0x24d   :  { %1262 = vrsqrt.f32 %v1865_v8 }
 0x24e   :  { %1264 = vrsqrt.f32 %v1885_v13 }
 0x250   :  { %v1892_v24 = vpop.eup %1256 }
 0x251   :  { %v1894_v1 = vpop.eup %1258  ;;  %v660_v10 = vmul.f32 %v1892_v24, %v1873_v45  ;;  %vm666_vm3 = vweird.f32 %v1892_v24 }
 0x252   :  { %v1901_v43 = vpop.eup %1260  ;;  %v650_v63 = vmul.f32 %v1894_v1, %v1857_v40  ;;  %vm656_vm10 = vweird.f32 %v1894_v1  ;;  %vm1957_vm9 = vmor %vm665_vm2, %vm666_vm3  ;;  %vm615_vm3 = vcmp.gt.f32.partialorder %v1873_v45, 0.0  ;;  %v2004_v45 = vsel %vm616_vm13, %v678_v23, 0.0 }
 0x253   :  { %v1908_v31 = vpop.eup %1262  ;;  %v640_v37 = vmul.f32 %v1901_v43, %v1861_v9  ;;  %v661_v20 = vmul.f32 %v1892_v24, %v660_v10  ;;  %vm646_vm11 = vweird.f32 %v1901_v43  ;;  %vm1978_vm2 = vmor %vm655_vm8, %vm656_vm10  ;;  %vm614_vm8 = vcmp.gt.f32.partialorder %v1857_v40, 0.0 }
 0x254   :  { %v1916_v0 = vpop.eup %1264  ;;  %v651_v33 = vmul.f32 %v1894_v1, %v650_v63  ;;  %v630_v51 = vmul.f32 %v1908_v31, %v1865_v8  ;;  %vm636_vm1 = vweird.f32 %v1908_v31  ;;  %vm1998_vm6 = vmor %vm645_vm12, %vm646_vm11  ;;  %vm612_vm11 = vcmp.gt.f32.partialorder %v1865_v8, 0.0 }
 0x255   :  { %v641_v61 = vmul.f32 %v1901_v43, %v640_v37  ;;  %v620_v27 = vmul.f32 %v1916_v0, %v1885_v13  ;;  %v662_v48 = vmul.f32 0.5, %v661_v20  ;;  %vm626_vm7 = vweird.f32 %v1916_v0  ;;  %vm2020_vm10 = vmor %vm635_vm15, %vm636_vm1 }
 0x256   :  { %v652_v39 = vmul.f32 0.5, %v651_v33  ;;  %v631_v56 = vmul.f32 %v1908_v31, %v630_v51  ;;  %vm627_vm12 = vmor %vm625_vm4, %vm626_vm7  ;;  %vm611_vm13 = vcmp.gt.f32.partialorder %v1885_v13, 0.0 }
 0x257   :  { %v642_v2 = vmul.f32 0.5, %v641_v61  ;;  %v621_v54 = vmul.f32 %v1916_v0, %v620_v27  ;;  %v663_v57 = vsub.f32 1.5, %v662_v48 }
 0x258   :  { %v653_v30 = vsub.f32 1.5, %v652_v39  ;;  %v632_v5 = vmul.f32 0.5, %v631_v56 }
 0x259   :  { %v643_v18 = vsub.f32 1.5, %v642_v2  ;;  %v622_v21 = vmul.f32 0.5, %v621_v54  ;;  %v664_v59 = vmul.f32 %v1892_v24, %v663_v57 }
 0x25a   :  { %v633_v10 = vsub.f32 1.5, %v632_v5  ;;  %v654_v35 = vmul.f32 %v1894_v1, %v653_v30 }
 0x25b   :  { %v623_v37 = vsub.f32 1.5, %v622_v21  ;;  %v644_v53 = vmul.f32 %v1901_v43, %v643_v18  ;;  %v668_v33 = vsel %vm1957_vm9, %v1892_v24, %v664_v59  ;;  %v2008_v24 = vsel %vm617_vm14, %v688_v46, 0.0 }
 0x25c   :  { %v634_v55 = vmul.f32 %v1908_v31, %v633_v10  ;;  %v658_v60 = vsel %vm1978_vm2, %v1894_v1, %v654_v35  ;;  %v2024_v15 = vsel %vm615_vm3, %v668_v33, 0.0  ;;  %vm613_vm9 = vcmp.gt.f32.partialorder %v1861_v9, 0.0 }
 0x25d   :  { %v624_v27 = vmul.f32 %v1916_v0, %v623_v37  ;;  %v648_v40 = vsel %vm1998_vm6, %v1901_v43, %v644_v53  ;;  %v702_v34 = vsel %vm614_vm8, %v658_v60, 0.0 }
 0x25e   :  { %v638_v9 = vsel %vm2020_vm10, %v1908_v31, %v634_v55  ;;  %v701_v43 = vsel %vm613_vm9, %v648_v40, 0.0 }
 0x25f   :  { %v700_v56 = vsel %vm612_vm11, %v638_v9, 0.0  ;;  %v1027_v9 = vld [vmem:[%s2100_s10] sm:$0x1] }
 0x26b   :  { %v1855_v14 = vpop.f32.mrf.mxu0 }
 0x273   :  { %v1859_v11 = vpop.f32.mrf.mxu0 }
 0x274   :  { %v773_v42 = vmul.f32 %v1859_v11, %v700_v56 }
 0x27b   :  { %v1863_v44 = vpop.f32.mrf.mxu0 }
 0x27c   :  { %v774_v38 = vmul.f32 %v1863_v44, %v701_v43 }
 0x283   :  { %v1870_v6 = vpop.f32.mrf.mxu0 }
 0x284   :  { %v775_v39 = vmul.f32 %v1870_v6, %v702_v34 }
 0x28b   :  { %v1887_v19 = vpop.f32.mrf.mxu0 }
 0x28c   :  { %v776_v48 = vmul.f32 %v1887_v19, %v2024_v15 }
 0x293   :  { %v1914_v62 = vpop.f32.mrf.mxu0 }
 0x294   :  { %v777_v1 = vmul.f32 %v1914_v62, %v2004_v45  ;;  %v628_v62 = vsel %vm627_vm12, %v1916_v0, %v624_v27  ;;  %v2134_v0 = vlaneseq }
 0x295   :  { %v699_v8 = vsel %vm611_vm13, %v628_v62, 0.0 }
 0x296   :  { %v772_v31 = vmul.f32 %v1855_v14, %v699_v8  ;;  %v1266_v14 = vld [vmem:[%s2091_s1 + $0x28] sm:$0xff]  ;;  %v863_v2 = vshrl.u32 %v2134_v0, 7 }
 0x298   :  { %v869_v57 = vadd.s32 48, %v863_v2  ;;  %v868_v5 = vadd.s32 40, %v863_v2  ;;  %v867_v29 = vadd.s32 32, %v863_v2  ;;  %v866_v18 = vadd.s32 24, %v863_v2 }
 0x299   :  { %v865_v32 = vadd.s32 16, %v863_v2  ;;  %v864_v59 = vadd.s32 8, %v863_v2 }
 0x29b   :  { %v766_v25 = vpop.f32.mrf.mxu0 }
 0x29c   :  { %v778_v61 = vmul.f32 %v766_v25, %v2008_v24  ;;  %v870_v25 = vadd.s32 56, %v863_v2 }
 0x2a3   :  { %v769_v20 = vpop.f32.mrf.mxu0 }
 0x2a4   :  { %v779_v51 = vmul.f32 %v769_v20, %v1984_v28 }
 0x2a6   :  { %812 = vmatpush.msra.mxu1 %v779_v51 }
 0x2a8   :  { %813 = vmatpush.msra.mxu1 %v778_v61 }
 0x2aa   :  { %814 = vmatpush.msra.mxu1 %v777_v1 }
 0x2ac   :  { %815 = vmatpush.msra.mxu1 %v776_v48  ;;  %v1032_v48 = vpop.permute.xlu0 %1031 }
 0x2ae   :  { %816 = vmatpush.msra.mxu1 %v775_v39 }
 0x2b0   :  { %817 = vmatpush.msra.mxu1 %v774_v38 }
 0x2b2   :  { %818 = vmatpush.msra.mxu1 %v773_v42 }
 0x2b4   :  { %819 = vmatpush.msra.mxu1 %v772_v31 }
 0x2b5   :  { %1144 = vmatmul.msk.f32.vlgmr.msra.gmra.mxu1 %vm90_vm0, %v1651_v52 }
 0x2bd   :  { %1145 = vmatmul.msk.f32.gmra.mxu1 %vm90_vm0, %v1630_v36 }
 0x2c5   :  { %1146 = vmatmul.msk.f32.gmra.mxu1 %vm90_vm0, %v1614_v22 }
 0x2cd   :  { %1147 = vmatmul.msk.f32.gmra.mxu1 %vm90_vm0, %v1594_v58 }
 0x2d5   :  { %1148 = vmatmul.msk.f32.gmra.mxu1 %vm90_vm0, %v1826_v50 }
 0x2dd   :  { %1149 = vmatmul.msk.f32.gmra.mxu1 %vm90_vm0, %v1266_v14 }
 0x2e5   :  { %1150 = vmatmul.msk.f32.gmra.mxu1 %vm90_vm0, %v1581_v41 }
 0x2ed   :  { %1151 = vmatmul.msk.f32.gmra.mxu1 %vm90_vm0, %v1574_v26  ;;  %v861_v26 = vld [vmem:[%s2094_s4] sm:$0x3] }
 0x2ee   :  { %v871_v47 = vperm.slane %v861_v26, 0  ;;  %v896_v30 = vperm.slane %v861_v26, 1 }
 0x2f0   :  { %vm879_vm14 = vcmp.eq.s32.totalorder %v870_v25, %v871_v47  ;;  %vm904_vm15 = vcmp.eq.s32.totalorder %v870_v25, %v896_v30  ;;  %vm878_vm1 = vcmp.eq.s32.totalorder %v869_v57, %v871_v47  ;;  %vm903_vm2 = vcmp.eq.s32.totalorder %v869_v57, %v896_v30 }
 0x2f1   :  { %1168 = vmatpush.msk.msra.mxu2 %vm879_vm14, %v1295_v12  ;;  %1180 = vmatpush.msk.msrb.mxu3 %vm904_vm15, %v1295_v12  ;;  %vm877_vm3 = vcmp.eq.s32.totalorder %v868_v5, %v871_v47  ;;  %vm902_vm4 = vcmp.eq.s32.totalorder %v868_v5, %v896_v30  ;;  %vm876_vm7 = vcmp.eq.s32.totalorder %v867_v29, %v871_v47 }
 0x2f2   :  { %vm901_vm6 = vcmp.eq.s32.totalorder %v867_v29, %v896_v30  ;;  %vm875_vm8 = vcmp.eq.s32.totalorder %v866_v18, %v871_v47  ;;  %vm900_vm10 = vcmp.eq.s32.totalorder %v866_v18, %v896_v30  ;;  %vm874_vm9 = vcmp.eq.s32.totalorder %v865_v32, %v871_v47 }
 0x2f3   :  { %1169 = vmatpush.msk.msra.mxu2 %vm878_vm1, %v1295_v12  ;;  %1181 = vmatpush.msk.msrb.mxu3 %vm903_vm2, %v1295_v12  ;;  %vm899_vm12 = vcmp.eq.s32.totalorder %v865_v32, %v896_v30  ;;  %vm873_vm11 = vcmp.eq.s32.totalorder %v864_v59, %v871_v47  ;;  %vm898_vm13 = vcmp.eq.s32.totalorder %v864_v59, %v896_v30 }
 0x2f4   :  { %vm872_vm14 = vcmp.eq.s32.totalorder %v863_v2, %v871_v47  ;;  %vm897_vm15 = vcmp.eq.s32.totalorder %v863_v2, %v896_v30 }
 0x2f5   :  { %1170 = vmatpush.msk.msra.mxu2 %vm877_vm3, %v1295_v12  ;;  %1182 = vmatpush.msk.msrb.mxu3 %vm902_vm4, %v1295_v12 }
 0x2f7   :  { %1171 = vmatpush.msk.msra.mxu2 %vm876_vm7, %v1295_v12  ;;  %1183 = vmatpush.msk.msrb.mxu3 %vm901_vm6, %v1295_v12 }
 0x2f9   :  { %1172 = vmatpush.msk.msra.mxu2 %vm875_vm8, %v1295_v12  ;;  %1184 = vmatpush.msk.msrb.mxu3 %vm900_vm10, %v1295_v12 }
 0x2fb   :  { %1173 = vmatpush.msk.msra.mxu2 %vm874_vm9, %v1295_v12  ;;  %1185 = vmatpush.msk.msrb.mxu3 %vm899_vm12, %v1295_v12 }
 0x2fd   :  { %1174 = vmatpush.msk.msra.mxu2 %vm873_vm11, %v1295_v12  ;;  %1186 = vmatpush.msk.msrb.mxu3 %vm898_vm13, %v1295_v12 }
 0x2ff   :  { %1175 = vmatpush.msk.msra.mxu2 %vm872_vm14, %v1295_v12  ;;  %1187 = vmatpush.msk.msrb.mxu3 %vm897_vm15, %v1295_v12 }
 0x332   :  { %v821_v36 = vpop.f32.mrf.mxu1 }
 0x333   :  { %v845_v22 = vmul.f32 %v821_v36, %v699_v8 }
 0x335   :  { %v853_v52 = vmax.f32 %v845_v22, 0.0 }
 0x337   :  { %921 = vxpose.xlu2.b32.start [1/8] (short) (narrow) %v853_v52, 32 }
 0x33a   :  { %v824_v58 = vpop.f32.mrf.mxu1 }
 0x33b   :  { %v846_v11 = vmul.f32 %v824_v58, %v700_v56 }
 0x33d   :  { %v854_v44 = vmax.f32 %v846_v11, 0.0 }
 0x33f   :  { %922 = vxpose.xlu2.b32.cont [2/8] (short) (narrow) %v854_v44, 32 }
 0x342   :  { %v827_v50 = vpop.f32.mrf.mxu1 }
 0x343   :  { %v847_v6 = vmul.f32 %v827_v50, %v701_v43  ;;  %v1034_v43 = vperm.slane %v1032_v48, 0 }
 0x345   :  { %v855_v13 = vmax.f32 %v847_v6, 0.0 }
 0x347   :  { %923 = vxpose.xlu2.b32.cont [3/8] (short) (narrow) %v855_v13, 32 }
 0x34a   :  { %v830_v19 = vpop.f32.mrf.mxu1 }
 0x34b   :  { %v848_v54 = vmul.f32 %v830_v19, %v702_v34 }
 0x34d   :  { %v856_v41 = vmax.f32 %v848_v54, 0.0 }
 0x34f   :  { %924 = vxpose.xlu2.b32.cont [4/8] (short) (narrow) %v856_v41, 32 }
 0x352   :  { %v833_v17 = vpop.f32.mrf.mxu1 }
 0x353   :  { %v849_v4 = vmul.f32 %v833_v17, %v2024_v15 }
 0x355   :  { %v857_v21 = vmax.f32 %v849_v4, 0.0 }
 0x357   :  { %925 = vxpose.xlu2.b32.cont [5/8] (short) (narrow) %v857_v21, 32 }
 0x35a   :  { %v836_v49 = vpop.f32.mrf.mxu1 }
 0x35b   :  { %v850_v10 = vmul.f32 %v836_v49, %v2004_v45 }
 0x35d   :  { %v858_v63 = vmax.f32 %v850_v10, 0.0 }
 0x35f   :  { %926 = vxpose.xlu2.b32.cont [6/8] (short) (narrow) %v858_v63, 32 }
 0x362   :  { %v839_v35 = vpop.f32.mrf.mxu1 }
 0x363   :  { %v851_v23 = vmul.f32 %v839_v35, %v2008_v24 }
 0x365   :  { %v859_v46 = vmax.f32 %v851_v23, 0.0 }
 0x367   :  { %927 = vxpose.xlu2.b32.cont [7/8] (short) (narrow) %v859_v46, 32 }
 0x36a   :  { %v842_v37 = vpop.f32.mrf.mxu1 }
 0x36b   :  { %v852_v3 = vmul.f32 %v842_v37, %v1984_v28 }
 0x36d   :  { %v860_v20 = vmax.f32 %v852_v3, 0.0 }
 0x36f   :  { %928 = vxpose.xlu2.b32.end [8/8] (short) (narrow) %v860_v20, 32 }
 0x3d0   :  { %v937_v53 = vpop.trf.xlu2 }
 0x3d1   :  { %1176 = vmatmul.msk.f32.vlgmr.msra.gmra.mxu2 %vm90_vm0, %v937_v53  ;;  %1188 = vmatmul.msk.f32.vlgmr.msrb.gmra.mxu3 %vm90_vm0, %v937_v53 }
 0x3d8   :  { %v938_v33 = vpop.trf.xlu2 }
 0x3d9   :  { %1177 = vmatmul.msk.f32.gmra.mxu2 %vm90_vm0, %v938_v33  ;;  %1189 = vmatmul.msk.f32.gmra.mxu3 %vm90_vm0, %v938_v33 }
 0x3e0   :  { %v939_v51 = vpop.trf.xlu2 }
 0x3e1   :  { %1178 = vmatmul.msk.f32.gmra.mxu2 %vm90_vm0, %v939_v51  ;;  %1190 = vmatmul.msk.f32.gmra.mxu3 %vm90_vm0, %v939_v51 }
 0x3e8   :  { %v940_v16 = vpop.trf.xlu2 }
 0x3e9   :  { %1179 = vmatmul.msk.f32.gmra.mxu2 %vm90_vm0, %v940_v16  ;;  %1191 = vmatmul.msk.f32.gmra.mxu3 %vm90_vm0, %v940_v16  ;;  %vm1058_vm0 = vcmask 122880  }
 0x454   :  { %v982_v28 = vpop.f32.mrf.mxu2  ;;  %v1011_v45 = vpop.f32.mrf.mxu3 }
 0x455   :  { %v1023_v34 = vmul.f32 %v1011_v45, %v982_v28 }
 0x45c   :  { %v985_v24 = vpop.f32.mrf.mxu2  ;;  %v1014_v55 = vpop.f32.mrf.mxu3 }
 0x45d   :  { %v1024_v1 = vmul.f32 %v1014_v55, %v985_v24 }
 0x464   :  { %v988_v60 = vpop.f32.mrf.mxu2  ;;  %v1017_v61 = vpop.f32.mrf.mxu3 }
 0x465   :  { %v1025_v40 = vmul.f32 %v1017_v61, %v988_v60 }
 0x46c   :  { %v991_v7 = vpop.f32.mrf.mxu2  ;;  %v1020_v15 = vpop.f32.mrf.mxu3 }
 0x46d   :  { %v1026_v27 = vmul.f32 %v1020_v15, %v991_v7 }
 0x46f   :  { %1050 = vmatpush.msrb.mxu2 %v1026_v27 }
 0x471   :  { %1051 = vmatpush.msrb.mxu2 %v1025_v40 }
 0x473   :  { %1052 = vmatpush.msrb.mxu2 %v1024_v1 }
 0x475   :  { %1053 = vmatpush.msrb.mxu2 %v1023_v34 }
 0x476   :  { %1192 = vmatmul.msk.f32.vlgmr.msrb.gmra.mxu2 %vm144_vm5, %v1027_v9 }
 0x4f9   :  { %v1055_v62 = vpop.f32.mrf.mxu2 }
 0x4fa   :  { %v1056_v39 = vadd.f32 %v1055_v62, %v1034_v43 }
 0x4fc   :  { %1059 = vst.msk [vmem:[#allocation3] sm:$0x1] %vm1058_vm0, %v1056_v39 }
 0x4fd   :  { %1070 = dma.vmem_to_hbm [thread:$0]  %s1066_s21, 16, %s1068_s24, [#allocation4]  }
 0x4fe   :  { %1291 = dma.done.wait [#allocation4], 16  }
 0x4ff   :  { %1292 = vsyncadd [#allocation4], 4294967280 }
 0x500   :  { %1075 = vsyncpa [#allocation4], 1 }

</bundles_post_ra>
